<compile_context>
chip_gen: v6e
topology: v6e:2x2x1
jax: 0.10.0
libtpu: 0.0.40
codegen_flags: <defaults>
</compile_context>

<pallas_src>
import functools

import jax
import jax.numpy as jnp
from jax.experimental import pallas as pl
from jax.experimental.pallas import tpu as pltpu


# ----------------------------------------------------------------------------
# Helpers / tuning constants
# ----------------------------------------------------------------------------
def _round_up(x: int, m: int) -> int:
    return ((x + m - 1) // m) * m


_RESIDENT_TABLE_MAX_BYTES = 12 * 1024 * 1024   # fits v7x 64 MiB even if 2x-buffered
_RESIDENT_MAX_VOCAB = 4096                     # bound one-hot width / wasted FLOPs
_RESIDENT_TOKENS_PER_STEP = 256                # MXU M-streaming width on v6e/v7x
_DMA_TOKENS_PER_STEP = 64                      # concurrent row DMAs per grid step
_DMA_MAX_TOKENS_PER_CALL = 1 << 17             # bound SMEM ids array (~512 KiB)


# ----------------------------------------------------------------------------
# Path 1: resident table, one-hot gather on the MXU (small vocab)
# ----------------------------------------------------------------------------
def _resident_onehot_kernel(ids_ref, table_ref, out_ref):
    # ids_ref:   (T, 1) int32 token ids for this tile (VMEM)
    # table_ref: (vocab, dim) full embedding table, resident across grid steps
    # out_ref:   (T, dim) output tile
    ids = ids_ref[...]                                    # (T, 1)
    t_tokens = ids.shape[0]
    vocab_size = table_ref.shape[0]
    vocab_iota = jax.lax.broadcasted_iota(jnp.int32, (t_tokens, vocab_size), 1)
    onehot = (vocab_iota == ids).astype(table_ref.dtype)  # (T, vocab)
    out_ref[...] = jnp.dot(
        onehot, table_ref[...], preferred_element_type=jnp.float32
    ).astype(out_ref.dtype)


def _resident_gather(ids_flat, emb_table):
    (n_tokens,) = ids_flat.shape
    vocab_size, dim = emb_table.shape
    itemsize = emb_table.dtype.itemsize

    t_tile = min(_RESIDENT_TOKENS_PER_STEP, _round_up(n_tokens, 16))
    n_pad = _round_up(n_tokens, t_tile)
    grid = (n_pad // t_tile,)

    ids_pad = jnp.pad(ids_flat, (0, n_pad - n_tokens)).reshape(n_pad, 1)

    # VMEM budget: table (assume the pipeline may double-buffer the constant
    # block), the (T, vocab) one-hot intermediate, double-buffered output
    # tiles and id tiles. Cap at 48 MiB (safe on v7x's 64 MiB physical VMEM).
    table_bytes = vocab_size * dim * itemsize
    vmem_need = (2 * table_bytes
                 + t_tile * vocab_size * 4
                 + 2 * t_tile * dim * itemsize
                 + 2 * t_tile * 4)
    vmem_limit = max(32 * 1024 * 1024,
                     min(48 * 1024 * 1024, int(vmem_need * 3 // 2)))

    grid_spec = pltpu.PrefetchScalarGridSpec(
        num_scalar_prefetch=0,
        grid=grid,
        in_specs=[
            # (T, 1) tile of token ids for this step.
            pl.BlockSpec((t_tile, 1), lambda g: (g, 0)),
            # Full table, same block every step -> fetched once, stays resident.
            pl.BlockSpec((vocab_size, dim), lambda g: (0, 0)),
        ],
        out_specs=pl.BlockSpec((t_tile, dim), lambda g: (g, 0)),
    )

    return pl.pallas_call(
        _resident_onehot_kernel,
        out_shape=jax.ShapeDtypeStruct((n_pad, dim), emb_table.dtype),
        grid_spec=grid_spec,
        compiler_params=pltpu.CompilerParams(
            dimension_semantics=("parallel",),
            vmem_limit_bytes=vmem_limit,
        ),
    )(ids_pad, emb_table)


# ----------------------------------------------------------------------------
# Path 2: table in HBM, batched manual-DMA row gather (large vocab)
# ----------------------------------------------------------------------------
def _dma_gather_kernel(ids_ref, table_hbm, out_ref, copy_sems, *,
                       tokens_per_step):
    # ids_ref:   (N_pad,) int32 token ids in SMEM (scalar prefetch)
    # table_hbm: (vocab, dim) embedding table left in HBM (memory_space=ANY)
    # out_ref:   (T, dim) output tile -- rows are DMA'd straight into it
    # copy_sems: (T,) DMA semaphores
    g = pl.program_id(0)
    base = g * tokens_per_step

    # Issue all T row gathers first so they are all in flight concurrently,
    # each landing directly in its row of the output block (no staging copy).
    copies = []
    for t in range(tokens_per_step):
        row = ids_ref[base + t]
        cp = pltpu.make_async_copy(
            table_hbm.at[pl.ds(row, 1)],
            out_ref.at[pl.ds(t, 1)],
            copy_sems.at[t],
        )
        cp.start()
        copies.append(cp)

    # Wait on the exact same descriptors (same src/dst/sem) that were started.
    for cp in copies:
        cp.wait()


def _dma_gather_one_call(ids_chunk, emb_table):
    (n_tokens,) = ids_chunk.shape
    vocab_size, dim = emb_table.shape

    t_tile = _DMA_TOKENS_PER_STEP
    n_pad = _round_up(n_tokens, t_tile)
    grid = (n_pad // t_tile,)

    ids_pad = jnp.pad(ids_chunk, (0, n_pad - n_tokens))

    kernel = functools.partial(_dma_gather_kernel, tokens_per_step=t_tile)

    grid_spec = pltpu.PrefetchScalarGridSpec(
        num_scalar_prefetch=1,
        grid=grid,
        in_specs=[
            pl.BlockSpec(memory_space=pl.ANY),   # table stays in HBM
        ],
        out_specs=pl.BlockSpec((t_tile, dim), lambda g, ids: (g, 0)),
        scratch_shapes=[
            pltpu.SemaphoreType.DMA((t_tile,)),
        ],
    )

    out = pl.pallas_call(
        kernel,
        out_shape=jax.ShapeDtypeStruct((n_pad, dim), emb_table.dtype),
        grid_spec=grid_spec,
        compiler_params=pltpu.CompilerParams(
            dimension_semantics=("parallel",),
        ),
    )(ids_pad, emb_table)
    return out[:n_tokens]


def _dma_gather(ids_flat, emb_table):
    (n_tokens,) = ids_flat.shape
    if n_tokens <= _DMA_MAX_TOKENS_PER_CALL:
        return _dma_gather_one_call(ids_flat, emb_table)
    # Keep the scalar-prefetched SMEM ids array bounded for huge token counts.
    chunks = []
    for start in range(0, n_tokens, _DMA_MAX_TOKENS_PER_CALL):
        chunks.append(_dma_gather_one_call(
            ids_flat[start:start + _DMA_MAX_TOKENS_PER_CALL], emb_table))
    return jnp.concatenate(chunks, axis=0)


# ----------------------------------------------------------------------------
# Public wrapper: equivalent of text_embedding.forward(x)
# ----------------------------------------------------------------------------
def text_embedding_forward(token_ids, emb_table, *, force_dma_gather=False):
    """Pallas equivalent of nn.Embedding(vocab, dim)(token_ids).

    token_ids: int [B, S]
    emb_table: [vocab_size, dim] (f32 or bf16)
    returns:   [B, S, dim] with emb_table's dtype
    """
    B, S = token_ids.shape
    vocab_size, dim = emb_table.shape
    n_tokens = B * S

    ids_flat = token_ids.reshape(n_tokens).astype(jnp.int32)
    # TODO(synk): torch raises on out-of-range ids; we clamp them instead.
    ids_flat = jnp.clip(ids_flat, 0, vocab_size - 1)

    # Pad dim to a multiple of 128 so output stores are dense full vst (not
    # masked partial stores) and the MXU N dimension is filled; slice it off
    # again at the end.
    dim_pad = _round_up(dim, 128)
    table = emb_table
    if dim_pad != dim:
        table = jnp.pad(emb_table, ((0, 0), (0, dim_pad - dim)))

    table_bytes = vocab_size * dim_pad * table.dtype.itemsize
    use_resident = (
        (table_bytes <= _RESIDENT_TABLE_MAX_BYTES)
        and (vocab_size <= _RESIDENT_MAX_VOCAB)
        and not force_dma_gather
    )

    if use_resident:
        out_flat = _resident_gather(ids_flat, table)
    else:
        out_flat = _dma_gather(ids_flat, table)

    out_flat = out_flat[:n_tokens]
    if dim_pad != dim:
        out_flat = out_flat[:, :dim]
    return out_flat.reshape(B, S, dim)


if __name__ == "__main__":
    # Small, deterministic setup consistent with the module's __init__.
    vocab_size = 64
    dim = 128
    B, S = 2, 8

    key = jax.random.PRNGKey(0)
    k_emb, k_ids = jax.random.split(key)

    # nn.Embedding default init: weight ~ N(0, 1)
    emb_table = jax.random.normal(k_emb, (vocab_size, dim), dtype=jnp.float32)
    token_ids = jax.random.randint(k_ids, (B, S), 0, vocab_size, dtype=jnp.int32)

    ref = jnp.take(emb_table, token_ids, axis=0)

    # Primary path for this configuration: resident table + one-hot MXU gather.
    out = jax.block_until_ready(text_embedding_forward(token_ids, emb_table))
    assert out.shape == (B, S, dim), out.shape
    assert jnp.allclose(out, ref), "resident-table path mismatch"

    # Large-vocab fallback: batched manual-DMA row gather (rows land directly
    # in the output block). Exercised with the same small inputs.
    out_dma = jax.block_until_ready(
        text_embedding_forward(token_ids, emb_table, force_dma_gather=True)
    )
    assert out_dma.shape == (B, S, dim), out_dma.shape
    assert jnp.allclose(out_dma, ref), "dma-gather path mismatch"

    # Non-multiple-of-128 dim: exercises the lane-padding / slicing plumbing.
    dim2, vocab2 = 100, 32
    k_emb2, k_ids2 = jax.random.split(jax.random.PRNGKey(1))
    emb_table2 = jax.random.normal(k_emb2, (vocab2, dim2), dtype=jnp.float32)
    token_ids2 = jax.random.randint(k_ids2, (1, 8), 0, vocab2, dtype=jnp.int32)
    ref2 = jnp.take(emb_table2, token_ids2, axis=0)
    out2 = jax.block_until_ready(text_embedding_forward(token_ids2, emb_table2))
    assert out2.shape == (1, 8, dim2), out2.shape
    assert jnp.allclose(out2, ref2), "padded-dim path mismatch"

    print("KERNEL_OK")
</pallas_src>

<mosaic_0001>
module attributes {stable_mosaic.version = 11 : i64} {
  func.func @_resident_onehot_kernel(%arg0: i32, %arg1: memref<16x1xi32, #tpu.memory_space<vmem>>, %arg2: memref<64x128xf32, #tpu.memory_space<vmem>>, %arg3: memref<16x128xf32, #tpu.memory_space<vmem>>) attributes {dimension_semantics = [#tpu.dimension_semantics<parallel>], iteration_bounds = array<i64: 1>, scalar_prefetch = 0 : i64, scratch_operands = 0 : i64, tpu.core_type = #tpu.core_type<tc>, window_params = [{transform_indices = @transform_0, window_bounds = array<i64: 16, 1>}, {pipeline_mode = #tpu.pipeline_mode<synchronous>, transform_indices = @transform_1, window_bounds = array<i64: 64, 128>}, {transform_indices = @transform_2, window_bounds = array<i64: 16, 128>}]} {
    %c0 = arith.constant 0 : index
    %c0_0 = arith.constant 0 : index
    %0 = vector.load %arg1[%c0, %c0_0] : memref<16x1xi32, #tpu.memory_space<vmem>>, vector<16x1xi32>
    %1 = tpu.iota {dimensions = array<i32: 1>} : vector<16x64xi32>
    %2 = vector.broadcast %0 : vector<16x1xi32> to vector<16x64xi32>
    %3 = arith.cmpi eq, %1, %2 : vector<16x64xi32>
    %4 = arith.extui %3 : vector<16x64xi1> to vector<16x64xi32>
    %5 = arith.sitofp %4 : vector<16x64xi32> to vector<16x64xf32>
    %c0_1 = arith.constant 0 : index
    %c0_2 = arith.constant 0 : index
    %6 = vector.load %arg2[%c0_1, %c0_2] : memref<64x128xf32, #tpu.memory_space<vmem>>, vector<64x128xf32>
    %cst = arith.constant dense<0.000000e+00> : vector<16x128xf32>
    %7 = tpu.matmul %5, %6, %cst {dimension_numbers = #tpu.dot_dimension_numbers<[1], [0], [0], [1], [0, 0, 1, 1], [], []>} : vector<16x64xf32>, vector<64x128xf32>, vector<16x128xf32> -> vector<16x128xf32>
    %c0_3 = arith.constant 0 : index
    %c0_4 = arith.constant 0 : index
    %8 = vector.load %arg3[%c0_3, %c0_4] : memref<16x128xf32, #tpu.memory_space<vmem>>, vector<16x128xf32>
    tpu.vector_store %arg3[%c0_3, %c0_4], %7 {strides = array<i32>} : memref<16x128xf32, #tpu.memory_space<vmem>>, vector<16x128xf32>,
    return
  }
  func.func @transform_0(%arg0: i32) -> (i32, i32) {
    %c0_i32 = arith.constant 0 : i32
    %c0_i32_0 = arith.constant 0 : i32
    return %arg0, %c0_i32 : i32, i32
  }
  func.func @transform_1(%arg0: i32) -> (i32, i32) {
    %c0_i32 = arith.constant 0 : i32
    %c0_i32_0 = arith.constant 0 : i32
    %c0_i32_1 = arith.constant 0 : i32
    return %c0_i32, %c0_i32_0 : i32, i32
  }
  func.func @transform_2(%arg0: i32) -> (i32, i32) {
    %c0_i32 = arith.constant 0 : i32
    %c0_i32_0 = arith.constant 0 : i32
    return %arg0, %c0_i32 : i32, i32
  }
}

</mosaic_0001>

<bundles_post_ra>
// kernel: tpu_custom_call.1
= control target key start
LH: loop header
LB: loop body
LE: loop exit
PB: predicated region body
PF: predicated region fallthrough
CT: control target
= control target key end

     0   :  { %7 = vsyncpa [#allocation3], 0  ;;  %s274_s0 = inlined_call_operand.vmem [shape: s32[16,1], index: 0, kind: input, shape index: {}]   ;;  %s275_s1 = inlined_call_operand.hbm [shape: f32[64,128], index: 1, kind: input, shape index: {}]   ;;  %s276_s2 = inlined_call_operand.hbm [shape: f32[16,128], index: 2, kind: output, shape index: {}]  }
   0x1   :  { %8 = vsyncpa [#allocation4], 0  ;;  %s235_s9 = smov [#allocation2]  }
   0x2   :  { %s16_s10 = sshll.u32 %s235_s9, 4  ;;  %s17_s10 = int_to_ptr.vmem [resolvable:$true] %s16_s10 }
   0x3   :  { %s199_s11 = scalar_lea.vmem %s17_s10, 1024  ;;  %p204_p1 = scmp.lt.s32.totalorder %s17_s10, %s17_s10 }
   0x4   :  { %p200_p0 = scmp.ne.s32.totalorder %s17_s10, %s199_s11  ;;  %p205_p2 = scmp.lt.s32.totalorder %s199_s11, %s199_s11 }
   0x6   :  { %p206_p3 = por %p205_p2, %p204_p1 }
   0x8   :  { %p207_p4 = pnand %p206_p3, %p200_p0 }
   0xa   :  { %210 = shalt.err (!%p207_p4)
}
   0xb   :  { %s236_s12 = smov 128   ;;  %s237_s13 = smov 8  }
   0xc   :  { %22 = dma.hbm_to_vmem [thread:$0]  %s275_s1, 1024, %s17_s10, [#allocation3], %s236_s12, %s236_s12, %s237_s13  }
   0xd   :  { %231 = dma.done.wait [#allocation3], 1024  }
   0xe   :  { %232 = vsyncadd [#allocation3], 4294966272  ;;  %v238_v0 = vmov 0   ;;  %v26_v1 = vld [vmem:[%s274_s0] sm:$0xff]  ;;  %v49_v2 = vld [vmem:[#allocation2 + $0x38] sm:$0xff]  ;;  %v28_v11 = vlaneseq  ;;  %vm50_vm0 = vcmask 523264  }
   0xf   :  { %190 = vset.pattern.permute.xlu0 %v238_v0  ;;  %165 = vmatprep.subr.mxu0 %v49_v2  ;;  %v48_v3 = vld [vmem:[#allocation2 + $0x30] sm:$0xff]  ;;  %v27_v4 = vld [vmem:[%s274_s0 + $0x8] sm:$0xff]  ;;  %v46_v6 = vld [vmem:[#allocation2 + $0x20] sm:$0xff]  ;;  %v239_v14 = vmov 0.0   ;;  %s240_s0 = smov [#allocation5]  }
  0x10   :  { %31 = vperm.xlu0 %190, %v26_v1   ;;  %166 = vmatpush3.msra.mxu0 %v49_v2  ;;  %v47_v5 = vld [vmem:[#allocation2 + $0x28] sm:$0xff]  ;;  %v45_v7 = vld [vmem:[#allocation2 + $0x18] sm:$0xff]  ;;  %v44_v8 = vld [vmem:[#allocation2 + $0x10] sm:$0xff]  ;;  %v29_v12 = vand.u32 127, %v28_v11  ;;  %s139_s1 = sshll.u32 %s240_s0, 4  ;;  %s140_s1 = int_to_ptr.vmem [resolvable:$true] %s139_s1 }
  0x11   :  { %167 = vmatprep.subr.mxu0 %v48_v3  ;;  %v43_v9 = vld [vmem:[#allocation2 + $0x8] sm:$0xff]  ;;  %v42_v10 = vld [vmem:[#allocation2] sm:$0xff]  ;;  %s211_s20 = scalar_lea.vmem %s140_s1, 256  ;;  %p216_p6 = scmp.lt.s32.totalorder %s140_s1, %s140_s1 }
  0x12   :  { %168 = vmatpush3.msra.mxu0 %v48_v3  ;;  %p212_p5 = scmp.ne.s32.totalorder %s140_s1, %s211_s20  ;;  %p217_p7 = scmp.lt.s32.totalorder %s211_s20, %s211_s20 }
  0x13   :  { %169 = vmatprep.subr.mxu0 %v47_v5 }
  0x14   :  { %34 = vperm.xlu0 %190, %v27_v4   ;;  %170 = vmatpush3.msra.mxu0 %v47_v5  ;;  %p218_p8 = por %p217_p7, %p216_p6 }
  0x15   :  { %171 = vmatprep.subr.mxu0 %v46_v6 }
  0x16   :  { %172 = vmatpush3.msra.mxu0 %v46_v6  ;;  %p219_p9 = pnand %p218_p8, %p212_p5 }
  0x17   :  { %173 = vmatprep.subr.mxu0 %v45_v7 }
  0x18   :  { %174 = vmatpush3.msra.mxu0 %v45_v7 }
  0x19   :  { %175 = vmatprep.subr.mxu0 %v44_v8 }
  0x1a   :  { %176 = vmatpush3.msra.mxu0 %v44_v8 }
  0x1b   :  { %177 = vmatprep.subr.mxu0 %v43_v9 }
  0x1c   :  { %178 = vmatpush3.msra.mxu0 %v43_v9 }
  0x1d   :  { %179 = vmatprep.subr.mxu0 %v42_v10 }
  0x1e   :  { %180 = vmatpush3.msra.mxu0 %v42_v10 }
  0x8b   :  { %v32_v13 = vpop.permute.xlu0 %31 }
  0x8c   :  { %vm36_vm1 = vcmp.eq.s32.totalorder %v29_v12, %v32_v13 }
  0x8d   :  { %v151_v15 = vsel %vm36_vm1, 1.0, %v239_v14 }
  0x8e   :  { %181 = vmatprep.mubr.msk.f32.mxu0 %vm50_vm0, %v151_v15 }
  0x8f   :  { %v35_v16 = vpop.permute.xlu0 %34 }
  0x90   :  { %vm37_vm2 = vcmp.eq.s32.totalorder %v29_v12, %v35_v16 }
  0x91   :  { %v152_v17 = vsel %vm37_vm2, 1.0, %v239_v14 }
  0x92   :  { %182 = vmatmul.mubr.msk.f32.vlgmr.msra.gmra.mxu0 %vm50_vm0, %v152_v17 }
 0x152   :  { %v183_v18 = vpop.f32.mrf.mxu0 }
 0x153   :  { %133 = vst [vmem:[#allocation5 + $0x8] sm:$0xff] %v183_v18 }
 0x154   :  { %v123_v19 = vpop.f32.mrf.mxu0 }
 0x155   :  { %132 = vst [vmem:[#allocation5] sm:$0xff] %v123_v19 }
 0x156   :  { %222 = shalt.err (!%p219_p9)
}
 0x157   :  { %145 = dma.vmem_to_hbm [thread:$0]  %s140_s1, 256, %s276_s2, [#allocation4], %s236_s12, %s236_s12, %s237_s13  }
 0x158   :  { %233 = dma.done.wait [#allocation4], 256  }
 0x159   :  { %234 = vsyncadd [#allocation4], 4294967040 }
 0x15a   :  { %149 = vsyncpa [#allocation3], 1 }
 0x15b   :  { %150 = vsyncpa [#allocation4], 1 }

</bundles_post_ra>
